<compile_context>
chip_gen: v7x
topology: tpu7x:2x2x1
jax: 0.10.0
libtpu: 0.0.40
codegen_flags: <defaults>
</compile_context>

<pallas_src>
import jax
import jax.numpy as jnp
from jax.experimental import pallas as pl
from jax.experimental.pallas import tpu as pltpu

# OGB atom feature cardinalities (get_atom_feature_dims()); each Embedding has
# (dim + 1) rows.
FULL_ATOM_FEATURE_DIMS = [119, 4, 12, 12, 10, 6, 6, 2, 2]
NUM_FEATS = len(FULL_ATOM_FEATURE_DIMS)
VOCAB_SIZES = [d + 1 for d in FULL_ATOM_FEATURE_DIMS]        # rows per table (total 182)
V_PAD = 128                                                  # per-table storage pad (params layout)
HALF = 128                                                   # one lane-group


def _round_up(x, m):
    return ((x + m - 1) // m) * m


def _pack_offsets(sizes, half=HALF):
    """Greedy packing of vocabularies so no range crosses a 128-lane boundary."""
    offs, off = [], 0
    for v in sizes:
        assert v <= half
        if (off % half) + v > half:                          # would straddle a lane-group
            off = ((off // half) + 1) * half
        offs.append(off)
        off += v
    return offs, off


OFFSETS, _PACKED_ROWS = _pack_offsets(VOCAB_SIZES)           # [0,120,128,141,154,165,172,179,182]
K_PACKED = _round_up(_PACKED_ROWS, HALF)                     # 256 fused contraction dim
N_HALVES = K_PACKED // HALF
FEATS_PER_HALF = [
    [f for f in range(NUM_FEATS) if OFFSETS[f] // HALF == h] for h in range(N_HALVES)
]


def _xavier_uniform(key, rows, cols, dtype=jnp.float32):
    # torch.nn.init.xavier_uniform_ on a (rows, cols) 2-D tensor:
    # fan_in = cols, fan_out = rows, bound = sqrt(6 / (fan_in + fan_out))
    bound = (6.0 / (rows + cols)) ** 0.5
    return jax.random.uniform(key, (rows, cols), dtype, -bound, bound)


def make_atom_encoder_params(key, emb_dim):
    """Stacked, zero-padded embedding tables: (F, V_PAD, emb_dim) float32."""
    keys = jax.random.split(key, NUM_FEATS)
    tables = []
    for f, v in enumerate(VOCAB_SIZES):
        w = _xavier_uniform(keys[f], v, emb_dim)
        w = jnp.pad(w, ((0, V_PAD - v), (0, 0)))             # zero-pad vocab dim
        tables.append(w)
    return jnp.stack(tables, axis=0)                         # (F, V_PAD, E)


def _atom_encoder_kernel(x_ref, tab_ref, o_ref, oh_ref):
    # x_ref:   (TN, F)            int32    offset-adjusted indices in [0, K_PACKED)
    # tab_ref: (K_PACKED, E_PAD)  bfloat16 all tables packed at OFFSETS
    # o_ref:   (TN, E_PAD)        out dtype, summed embeddings
    # oh_ref:  (TN, K_PACKED)     bfloat16 VMEM scratch: fused one-hot slab
    tn = x_ref.shape[0]
    idx = x_ref[...]                                          # (TN, F)
    iota = jax.lax.broadcasted_iota(jnp.int32, (tn, HALF), 1)
    for h in range(N_HALVES):                                 # 2 lane-aligned halves
        base = h * HALF
        acc = None
        for f in FEATS_PER_HALF[h]:                           # 128-wide compares only
            ids = idx[:, f:f + 1]                             # (TN, 1)
            oh = ids == (iota + base)                         # (TN, 128) bool
            acc = oh if acc is None else jnp.logical_or(acc, oh)  # ranges are disjoint
        if acc is None:
            oh_ref[:, base:base + HALF] = jnp.zeros((tn, HALF), jnp.bfloat16)
        else:
            oh_ref[:, base:base + HALF] = acc.astype(jnp.bfloat16)
    # Single fused MXU matmul: (TN, 256) @ (256, E_PAD), f32 accumulation.
    o_ref[...] = jnp.dot(oh_ref[...], tab_ref[...],
                         preferred_element_type=jnp.float32).astype(o_ref.dtype)


def atom_encoder_forward(x, tables, *, tile_n=4096, out_dtype=jnp.float32):
    """x: (N, F) integer, tables: (F, V_PAD, E) float32 -> (N, E) out_dtype."""
    n, f = x.shape
    assert f == NUM_FEATS
    fk, v_pad, emb = tables.shape
    assert fk == NUM_FEATS and v_pad >= max(VOCAB_SIZES)

    # ---- wrapper-side layout plumbing (done once, outside the grid) ----
    e_pad = _round_up(emb, 128)                               # lane-dense output
    tab_bf = tables.astype(jnp.bfloat16)
    if e_pad != emb:
        tab_bf = jnp.pad(tab_bf, ((0, 0), (0, 0), (0, e_pad - emb)))
    # Pack the 9 tables into one (K_PACKED, E_PAD) bf16 matrix at OFFSETS.
    packed_tab = jnp.zeros((K_PACKED, e_pad), jnp.bfloat16)
    for ff in range(NUM_FEATS):
        packed_tab = packed_tab.at[OFFSETS[ff]:OFFSETS[ff] + VOCAB_SIZES[ff]].set(
            tab_bf[ff, :VOCAB_SIZES[ff]])

    # Clip each feature into its valid vocab (prevents aliasing into the next
    # feature's packed rows; nn.Embedding would raise instead) and add offsets.
    vocab_arr = jnp.array(VOCAB_SIZES, jnp.int32)             # (F,)
    off_arr = jnp.array(OFFSETS, jnp.int32)                   # (F,)
    xi = jnp.clip(x.astype(jnp.int32), 0, vocab_arr - 1) + off_arr   # (N, F)

    # ---- tile selection ----
    n8 = _round_up(n, 8)
    tile_n = max(8, min(_round_up(tile_n, 8), n8))
    if n8 >= 16 and tile_n >= n8:
        # Keep >=2 grid steps so ("parallel",) actually shards across v7x's 2 TCs.
        tile_n = _round_up((n8 + 1) // 2, 8)
    n_pad = _round_up(n, tile_n)
    if n_pad != n:
        xi = jnp.pad(xi, ((0, n_pad - n), (0, 0)))            # padded rows: all-zero indices

    out_bytes = jnp.dtype(out_dtype).itemsize
    # VMEM budget (note: the (tile_n, 9) int32 index block pads its lane dim to
    # 128 in VMEM, so budget it at tile_n*128*4 B per pipeline buffer).
    slab_bytes = tile_n * K_PACKED * 2
    x_blk_bytes = tile_n * 128 * 4
    tab_bytes = K_PACKED * e_pad * 2
    out_blk_bytes = tile_n * e_pad * out_bytes
    vmem_bytes = slab_bytes + 2 * (x_blk_bytes + tab_bytes + out_blk_bytes)
    vmem_limit = min(max(32 << 20, vmem_bytes + (8 << 20)), 64 << 20)

    cost = pl.CostEstimate(
        flops=2 * n_pad * K_PACKED * e_pad,
        transcendentals=0,
        bytes_accessed=n_pad * (NUM_FEATS * 4 + e_pad * out_bytes) + K_PACKED * e_pad * 2,
    )

    grid = (n_pad // tile_n,)
    out = pl.pallas_call(
        _atom_encoder_kernel,
        out_shape=jax.ShapeDtypeStruct((n_pad, e_pad), out_dtype),
        grid_spec=pltpu.PrefetchScalarGridSpec(
            num_scalar_prefetch=0,
            grid=grid,
            in_specs=[
                pl.BlockSpec((tile_n, NUM_FEATS), lambda i: (i, 0)),   # index tile
                # Constant index_map: packed table DMA'd once, stays VMEM-resident.
                pl.BlockSpec((K_PACKED, e_pad), lambda i: (0, 0)),
            ],
            out_specs=pl.BlockSpec((tile_n, e_pad), lambda i: (i, 0)),
            scratch_shapes=[pltpu.VMEM((tile_n, K_PACKED), jnp.bfloat16)],
        ),
        compiler_params=pltpu.CompilerParams(
            dimension_semantics=("parallel",),                # shards across TCs (v7x)
            vmem_limit_bytes=vmem_limit,
        ),
        cost_estimate=cost,
    )(xi, packed_tab)

    if n_pad != n or e_pad != emb:
        out = out[:n, :emb]                                   # only re-slice if padded
    return out


def atom_encoder_reference(x, tables):
    # Pure-JAX reference: sum of per-feature embedding lookups (f32).
    out = jnp.zeros((x.shape[0], tables.shape[-1]), jnp.float32)
    for f in range(NUM_FEATS):
        out = out + tables[f][x[:, f]]
    return out


if __name__ == "__main__":
    key = jax.random.PRNGKey(0)
    k_tab, k_x = jax.random.split(key)

    emb_dim = 32
    n_nodes = 100                                             # not a tile multiple: tests padding
    tile_n = 32                                               # small tile -> multi-step grid

    tables = make_atom_encoder_params(k_tab, emb_dim)         # (9, 128, 32) float32

    # Deterministic synthetic atom features: each column within its valid vocab.
    cols = []
    xkeys = jax.random.split(k_x, NUM_FEATS)
    for f, v in enumerate(VOCAB_SIZES):
        cols.append(jax.random.randint(xkeys[f], (n_nodes,), 0, v, dtype=jnp.int32))
    x = jnp.stack(cols, axis=1)                               # (100, 9) int32

    out = atom_encoder_forward(x, tables, tile_n=tile_n)
    out = jax.block_until_ready(out)

    # Kernel uses bf16 tables with exact f32 accumulation -> compare against the
    # bf16-rounded tables gathered/summed in f32.
    tab_bf16 = tables.astype(jnp.bfloat16).astype(jnp.float32)
    ref = atom_encoder_reference(x, tab_bf16)

    assert out.shape == (n_nodes, emb_dim)
    assert jnp.allclose(out, ref, atol=1e-4, rtol=1e-4), "mismatch vs reference"

    # Also exercise the default large-tile path (and the >=2-grid-step clamp).
    out2 = jax.block_until_ready(atom_encoder_forward(x, tables))
    assert jnp.allclose(out2, ref, atol=1e-4, rtol=1e-4), "mismatch vs reference (default tile)"

    print("KERNEL_OK")
</pallas_src>

<mosaic_0001>
module attributes {stable_mosaic.version = 11 : i64} {
  func.func @_atom_encoder_kernel(%arg0: i32, %arg1: memref<32x9xi32, #tpu.memory_space<vmem>>, %arg2: memref<256x128xbf16, #tpu.memory_space<vmem>>, %arg3: memref<32x128xf32, #tpu.memory_space<vmem>>, %arg4: memref<32x256xbf16, #tpu.memory_space<vmem>>) attributes {dimension_semantics = [#tpu.dimension_semantics<parallel>], iteration_bounds = array<i64: 4>, scalar_prefetch = 0 : i64, scratch_operands = 1 : i64, tpu.core_type = #tpu.core_type<tc>, window_params = [{transform_indices = @transform_0, window_bounds = array<i64: 32, 9>}, {pipeline_mode = #tpu.pipeline_mode<synchronous>, transform_indices = @transform_1, window_bounds = array<i64: 256, 128>}, {transform_indices = @transform_2, window_bounds = array<i64: 32, 128>}]} {
    %c0 = arith.constant 0 : index
    %c0_0 = arith.constant 0 : index
    %0 = vector.load %arg1[%c0, %c0_0] : memref<32x9xi32, #tpu.memory_space<vmem>>, vector<32x9xi32>
    %1 = tpu.iota {dimensions = array<i32: 1>} : vector<32x128xi32>
    %2 = vector.extract_strided_slice %0 {offsets = [0, 0], sizes = [32, 1], strides = [1, 1]} : vector<32x9xi32> to vector<32x1xi32>
    %c0_i32 = arith.constant 0 : i32
    %3 = vector.broadcast %c0_i32 : i32 to vector<32x128xi32>
    %4 = arith.addi %1, %3 : vector<32x128xi32>
    %5 = vector.broadcast %2 : vector<32x1xi32> to vector<32x128xi32>
    %6 = arith.cmpi eq, %5, %4 : vector<32x128xi32>
    %7 = vector.extract_strided_slice %0 {offsets = [0, 1], sizes = [32, 1], strides = [1, 1]} : vector<32x9xi32> to vector<32x1xi32>
    %c0_i32_1 = arith.constant 0 : i32
    %8 = vector.broadcast %c0_i32_1 : i32 to vector<32x128xi32>
    %9 = arith.addi %1, %8 : vector<32x128xi32>
    %10 = vector.broadcast %7 : vector<32x1xi32> to vector<32x128xi32>
    %11 = arith.cmpi eq, %10, %9 : vector<32x128xi32>
    %12 = arith.ori %6, %11 : vector<32x128xi1>
    %13 = arith.extui %12 : vector<32x128xi1> to vector<32x128xi32>
    %14 = arith.sitofp %13 : vector<32x128xi32> to vector<32x128xf32>
    %15 = arith.truncf %14 : vector<32x128xf32> to vector<32x128xbf16>
    %c0_2 = arith.constant 0 : index
    %c0_3 = arith.constant 0 : index
    %16 = vector.load %arg4[%c0_2, %c0_3] : memref<32x256xbf16, #tpu.memory_space<vmem>>, vector<32x128xbf16>
    tpu.vector_store %arg4[%c0_2, %c0_3], %15 {strides = array<i32>} : memref<32x256xbf16, #tpu.memory_space<vmem>>, vector<32x128xbf16>,
    %17 = vector.extract_strided_slice %0 {offsets = [0, 2], sizes = [32, 1], strides = [1, 1]} : vector<32x9xi32> to vector<32x1xi32>
    %c128_i32 = arith.constant 128 : i32
    %18 = vector.broadcast %c128_i32 : i32 to vector<32x128xi32>
    %19 = arith.addi %1, %18 : vector<32x128xi32>
    %20 = vector.broadcast %17 : vector<32x1xi32> to vector<32x128xi32>
    %21 = arith.cmpi eq, %20, %19 : vector<32x128xi32>
    %22 = vector.extract_strided_slice %0 {offsets = [0, 3], sizes = [32, 1], strides = [1, 1]} : vector<32x9xi32> to vector<32x1xi32>
    %c128_i32_4 = arith.constant 128 : i32
    %23 = vector.broadcast %c128_i32_4 : i32 to vector<32x128xi32>
    %24 = arith.addi %1, %23 : vector<32x128xi32>
    %25 = vector.broadcast %22 : vector<32x1xi32> to vector<32x128xi32>
    %26 = arith.cmpi eq, %25, %24 : vector<32x128xi32>
    %27 = arith.ori %21, %26 : vector<32x128xi1>
    %28 = vector.extract_strided_slice %0 {offsets = [0, 4], sizes = [32, 1], strides = [1, 1]} : vector<32x9xi32> to vector<32x1xi32>
    %c128_i32_5 = arith.constant 128 : i32
    %29 = vector.broadcast %c128_i32_5 : i32 to vector<32x128xi32>
    %30 = arith.addi %1, %29 : vector<32x128xi32>
    %31 = vector.broadcast %28 : vector<32x1xi32> to vector<32x128xi32>
    %32 = arith.cmpi eq, %31, %30 : vector<32x128xi32>
    %33 = arith.ori %27, %32 : vector<32x128xi1>
    %34 = vector.extract_strided_slice %0 {offsets = [0, 5], sizes = [32, 1], strides = [1, 1]} : vector<32x9xi32> to vector<32x1xi32>
    %c128_i32_6 = arith.constant 128 : i32
    %35 = vector.broadcast %c128_i32_6 : i32 to vector<32x128xi32>
    %36 = arith.addi %1, %35 : vector<32x128xi32>
    %37 = vector.broadcast %34 : vector<32x1xi32> to vector<32x128xi32>
    %38 = arith.cmpi eq, %37, %36 : vector<32x128xi32>
    %39 = arith.ori %33, %38 : vector<32x128xi1>
    %40 = vector.extract_strided_slice %0 {offsets = [0, 6], sizes = [32, 1], strides = [1, 1]} : vector<32x9xi32> to vector<32x1xi32>
    %c128_i32_7 = arith.constant 128 : i32
    %41 = vector.broadcast %c128_i32_7 : i32 to vector<32x128xi32>
    %42 = arith.addi %1, %41 : vector<32x128xi32>
    %43 = vector.broadcast %40 : vector<32x1xi32> to vector<32x128xi32>
    %44 = arith.cmpi eq, %43, %42 : vector<32x128xi32>
    %45 = arith.ori %39, %44 : vector<32x128xi1>
    %46 = vector.extract_strided_slice %0 {offsets = [0, 7], sizes = [32, 1], strides = [1, 1]} : vector<32x9xi32> to vector<32x1xi32>
    %c128_i32_8 = arith.constant 128 : i32
    %47 = vector.broadcast %c128_i32_8 : i32 to vector<32x128xi32>
    %48 = arith.addi %1, %47 : vector<32x128xi32>
    %49 = vector.broadcast %46 : vector<32x1xi32> to vector<32x128xi32>
    %50 = arith.cmpi eq, %49, %48 : vector<32x128xi32>
    %51 = arith.ori %45, %50 : vector<32x128xi1>
    %52 = vector.extract_strided_slice %0 {offsets = [0, 8], sizes = [32, 1], strides = [1, 1]} : vector<32x9xi32> to vector<32x1xi32>
    %c128_i32_9 = arith.constant 128 : i32
    %53 = vector.broadcast %c128_i32_9 : i32 to vector<32x128xi32>
    %54 = arith.addi %1, %53 : vector<32x128xi32>
    %55 = vector.broadcast %52 : vector<32x1xi32> to vector<32x128xi32>
    %56 = arith.cmpi eq, %55, %54 : vector<32x128xi32>
    %57 = arith.ori %51, %56 : vector<32x128xi1>
    %58 = arith.extui %57 : vector<32x128xi1> to vector<32x128xi32>
    %59 = arith.sitofp %58 : vector<32x128xi32> to vector<32x128xf32>
    %60 = arith.truncf %59 : vector<32x128xf32> to vector<32x128xbf16>
    %c0_10 = arith.constant 0 : index
    %c128 = arith.constant 128 : index
    %61 = vector.load %arg4[%c0_10, %c128] : memref<32x256xbf16, #tpu.memory_space<vmem>>, vector<32x128xbf16>
    tpu.vector_store %arg4[%c0_10, %c128], %60 {strides = array<i32>} : memref<32x256xbf16, #tpu.memory_space<vmem>>, vector<32x128xbf16>,
    %c0_11 = arith.constant 0 : index
    %c0_12 = arith.constant 0 : index
    %62 = vector.load %arg4[%c0_11, %c0_12] : memref<32x256xbf16, #tpu.memory_space<vmem>>, vector<32x256xbf16>
    %c0_13 = arith.constant 0 : index
    %c0_14 = arith.constant 0 : index
    %63 = vector.load %arg2[%c0_13, %c0_14] : memref<256x128xbf16, #tpu.memory_space<vmem>>, vector<256x128xbf16>
    %cst = arith.constant dense<0.000000e+00> : vector<32x128xf32>
    %64 = tpu.matmul %62, %63, %cst {dimension_numbers = #tpu.dot_dimension_numbers<[1], [0], [0], [1], [0, 0, 1, 1], [], []>} : vector<32x256xbf16>, vector<256x128xbf16>, vector<32x128xf32> -> vector<32x128xf32>
    %c0_15 = arith.constant 0 : index
    %c0_16 = arith.constant 0 : index
    %65 = vector.load %arg3[%c0_15, %c0_16] : memref<32x128xf32, #tpu.memory_space<vmem>>, vector<32x128xf32>
    tpu.vector_store %arg3[%c0_15, %c0_16], %64 {strides = array<i32>} : memref<32x128xf32, #tpu.memory_space<vmem>>, vector<32x128xf32>,
    return
  }
  func.func @transform_0(%arg0: i32) -> (i32, i32) {
    %c0_i32 = arith.constant 0 : i32
    %c0_i32_0 = arith.constant 0 : i32
    return %arg0, %c0_i32 : i32, i32
  }
  func.func @transform_1(%arg0: i32) -> (i32, i32) {
    %c0_i32 = arith.constant 0 : i32
    %c0_i32_0 = arith.constant 0 : i32
    %c0_i32_1 = arith.constant 0 : i32
    return %c0_i32, %c0_i32_0 : i32, i32
  }
  func.func @transform_2(%arg0: i32) -> (i32, i32) {
    %c0_i32 = arith.constant 0 : i32
    %c0_i32_0 = arith.constant 0 : i32
    return %arg0, %c0_i32 : i32, i32
  }
}

</mosaic_0001>

<bundles_post_ra>
// kernel: tpu_custom_call.1
= control target key start
LH: loop header
LB: loop body
LE: loop exit
PB: predicated region body
PF: predicated region fallthrough
CT: control target
= control target key end

     0   :  { %7 = vsyncpa [#allocation4], 0  ;;  %s1122_s0 = inlined_call_operand.vmem [shape: s32[128,9], index: 0, kind: input, shape index: {}]   ;;  %s1123_s1 = inlined_call_operand.vmem [shape: bf16[256,128], index: 1, kind: input, shape index: {}]   ;;  %s1124_s2 = inlined_call_operand.hbm [shape: f32[128,128], index: 2, kind: output, shape index: {}]  }
   0x1   :  { %9 = vsyncpa [#allocation4 + $0x1], 0  ;;  %s875_s9 = smov 0   ;;  %s877_s10 = smov 0  }
   0x2   :  { %s879_s11 = smov 0   ;;  %s881_s12 = smov 0  }
   0x3 LB: > { %s896_s13 = sadd.s32 4294967295, %s844_s12   ;;  %s610_s14 = sadd.s32 4294967294, %s844_s12   ;;  %s844_s12 = sphi %s881_s12, %s1136_s12   ;;  %s840_s11 = sphi %s879_s11, %s1135_s11   ;;  %s836_s10 = sphi %s877_s10, %s1134_s10   ;;  %s832_s9 = sphi %s875_s9, %s1133_s9  }
   0x4   : > { %s900_s15 = sadd.s32 1, %s844_s12   ;;  %s69_s16 = sadd.s32 1, %s840_s11 }
   0x5   : > { %s66_s17 = ssub.s32 %s844_s12, %s900_s15  ;;  %p79_p0 = scmp.ne.s32.totalorder %s840_s11, %s836_s10 }
   0x6   : > { %p67_p1 = scmp.eq.s32.totalorder %s66_s17, 0  ;;  %p80_p2 = scmp.eq.s32.totalorder %s896_s13, 3 }
   0x7   : > { %p85_p3 = scmp.ne.s32.totalorder %s836_s10, %s832_s9  ;;  %p86_p4 = scmp.eq.s32.totalorder %s610_s14, 3 }
   0x8   : > { %s911_s18 = scalar_select %p67_p1, %s840_s11, %s69_s16  }
   0x9   : > { %p913_p5 = por %p80_p2, %p79_p0  ;;  %p917_p6 = por %p86_p4, %p85_p3 }
   0xa   : > { %p613_p7 = scmp.ge.s32.totalorder %s844_s12, 1  ;;  %p116_p8 = scmp.lt.s32.totalorder %s844_s12, 5 }
   0xc   : > { %p117_p9 = pnand %p613_p7, %p116_p8 }
   0xd   : > { %s615_s21 = sshll.u32 (!%p117_p9), %s896_s13, 2  ;;  %v846_v0 = vmov (!%p117_p9), 2   ;;  %v847_v5 = vmov (!%p117_p9), 3   ;;  %v848_v6 = vmov (!%p117_p9), 4   ;;  %v849_v7 = vmov (!%p117_p9), 5   ;;  %v766_v12 = vld [vmem:[%s1123_s1 + $0x40] sm:$0xff] (!%p117_p9)  }
   0xe   : > { %120 = sbr.rel (%p117_p9) target bundleno = 480 (0x1e0), region = 28  ;;  %748 = vset.pattern.permute.xlu1 (!%p117_p9), %v846_v0  ;;  %747 = vset.pattern.permute.xlu0 (!%p117_p9), %v846_v0  ;;  %p139_p10 = scmp.lt.s32.totalorder (!%p117_p9), %s615_s21, 15  ;;  %v850_v8 = vmov (!%p117_p9), 6   ;;  %v851_v9 = vmov (!%p117_p9), 7   ;;  %v852_v10 = vmov (!%p117_p9), 8   ;;  %v853_v11 = vmov (!%p117_p9), 0  }
   0xf   : > { %v767_v13 = vld [vmem:[%s1123_s1] sm:$0xff] (!%p117_p9)   ;;  %651 = vmatprep.subr.bf16.mxu0 (!%p117_p9), %v766_v12  ;;  %679 = vmatprep.subr.bf16.mxu1 (!%p117_p9), %v766_v12  ;;  %v768_v14 = vld [vmem:[%s1123_s1 + $0x48] sm:$0xff] (!%p117_p9)   ;;  %v854_v16 = vmov (!%p117_p9), 1   ;;  %v770_v17 = vld [vmem:[%s1123_s1 + $0x50] sm:$0xff] (!%p117_p9)   ;;  %v150_v45 = vlaneseq (!%p117_p9)  ;;  %v1127_v54 = vmov (!%p117_p9), 0  ;;  %v1129_v57 = vmov (!%p117_p9), 0 }
  0x10   : > { %652 = vmatpush3.bf16.msra.mxu0 (!%p117_p9), %v767_v13  ;;  %v769_v15 = vld [vmem:[%s1123_s1 + $0x8] sm:$0xff] (!%p117_p9)   ;;  %687 = vmatpush3.bf16.msra.mxu1 (!%p117_p9), %v767_v13  ;;  %v771_v18 = vld [vmem:[%s1123_s1 + $0x10] sm:$0xff] (!%p117_p9)   ;;  %v772_v19 = vld [vmem:[%s1123_s1 + $0x58] sm:$0xff] (!%p117_p9)   ;;  %v855_v60 = vmov (!%p117_p9), 0.0   ;;  %v856_v12 = vmov (!%p117_p9), 1.0|1.0  }
  0x11   : > { %653 = vmatprep.subr.bf16.mxu0 (!%p117_p9), %v768_v14  ;;  %680 = vmatprep.subr.bf16.mxu1 (!%p117_p9), %v768_v14  ;;  %v773_v20 = vld [vmem:[%s1123_s1 + $0x18] sm:$0xff] (!%p117_p9)   ;;  %v774_v21 = vld [vmem:[%s1123_s1 + $0x60] sm:$0xff] (!%p117_p9)   ;;  %v776_v23 = vld [vmem:[%s1123_s1 + $0x68] sm:$0xff] (!%p117_p9)   ;;  %v1019_v47 = vand.u32 (!%p117_p9), 127, %v150_v45  ;;  %s135_s17 = sand.u32 (!%p117_p9), 1, %s836_s10   ;;  %s646_s24 = sshll.u32 (!%p117_p9), %s896_s13, 9 }
  0x12   : > { %v775_v22 = vld [vmem:[%s1123_s1 + $0x20] sm:$0xff] (!%p117_p9)   ;;  %v777_v24 = vld [vmem:[%s1123_s1 + $0x28] sm:$0xff] (!%p117_p9)   ;;  %v778_v25 = vld [vmem:[%s1123_s1 + $0x70] sm:$0xff] (!%p117_p9)   ;;  %s1079_s27 = scalar_lea.hbm (!%p117_p9), %s1124_s2, %s646_s24  ;;  %s1081_s28 = scalar_lea.sflag (!%p117_p9), [#allocation4], %s135_s17 }
  0x13   : > { %v779_v26 = vld [vmem:[%s1123_s1 + $0x30] sm:$0xff] (!%p117_p9)   ;;  %v780_v27 = vld [vmem:[%s1123_s1 + $0x78] sm:$0xff] (!%p117_p9)   ;;  %v1022_v50 = vadd.s32 (!%p117_p9), 128, %v1019_v47  ;;  %s857_s13 = smov (!%p117_p9), [#allocation3]  }
  0x14   : > { %654 = vmatpush3.bf16.msra.mxu0 (!%p117_p9), %v769_v15  ;;  %688 = vmatpush3.bf16.msra.mxu1 (!%p117_p9), %v769_v15  ;;  %v781_v28 = vld [vmem:[%s1123_s1 + $0x38] sm:$0xff] (!%p117_p9)   ;;  %s786_s30 = sshll.u32 (!%p117_p9), %s857_s13, 4  ;;  %s787_s30 = int_to_ptr.vmem [resolvable:$false] %s786_s30 }
  0x15   : > { %s1138_s21 = smov (!%p139_p10, %s615_s21), 15  ;;  %655 = vmatprep.subr.bf16.mxu0 %v770_v17  ;;  %681 = vmatprep.subr.bf16.mxu1 %v770_v17  ;;  %s788_s3 = scalar_lea.vmem %s787_s30, 1024 }
  0x16   : > { %s616_s22 = sshll.u32 %s1138_s21, 3  ;;  %s614_s21 = sshll.u32 %s135_s17, 5 }
  0x17   : > { %s142_s25 = scalar_lea.vmem %s1122_s0, %s616_s22  ;;  %s137_s22 = scalar_lea.vmem [#allocation3], %s614_s21 }
  0x18   : > { %v927_v1 = vld [vmem:[%s142_s25 + $0x10] sm:$0xff]  ;;  %v929_v2 = vld [vmem:[%s142_s25] sm:$0xff]  ;;  %v931_v3 = vld [vmem:[%s142_s25 + $0x18] sm:$0xff]  ;;  %656 = vmatpush3.bf16.msra.mxu0 %v771_v18  ;;  %689 = vmatpush3.bf16.msra.mxu1 %v771_v18  ;;  %s548_s23 = sshll.u32 %s137_s22, 4  ;;  %s1074_s23 = int_to_ptr.vmem [resolvable:$true] %s548_s23 }
  0x19   : > { %208 = vperm.xlu1 %748, %v927_v1   ;;  %202 = vperm.xlu0 %747, %v929_v2   ;;  %v935_v4 = vld [vmem:[%s142_s25 + $0x8] sm:$0xff]  ;;  %s782_s29 = scalar_lea.vmem %s1074_s23, 512  ;;  %p789_p0 = scmp.lt.s32.totalorder %s1074_s23, %s787_s30 }
  0x1a   : > { %657 = vmatprep.subr.bf16.mxu0 %v772_v19  ;;  %682 = vmatprep.subr.bf16.mxu1 %v772_v19  ;;  %p783_p11 = scmp.ne.s32.totalorder %s1074_s23, %s782_s29  ;;  %p790_p1 = scmp.lt.s32.totalorder %s788_s3, %s782_s29 }
  0x1c   : > { %658 = vmatpush3.bf16.msra.mxu0 %v773_v20  ;;  %690 = vmatpush3.bf16.msra.mxu1 %v773_v20  ;;  %p784_p12 = pnand %p783_p11, %p913_p5  ;;  %p791_p2 = por %p790_p1, %p789_p0 }
  0x1d   : > { %211 = vperm.xlu1 %748, %v931_v3   ;;  %205 = vperm.xlu0 %747, %v935_v4  }
  0x1e   : > { %659 = vmatprep.subr.bf16.mxu0 %v774_v21  ;;  %683 = vmatprep.subr.bf16.mxu1 %v774_v21  ;;  %p785_p13 = pneg %p784_p12 }
  0x20   : > { %660 = vmatpush3.bf16.msra.mxu0 %v775_v22  ;;  %691 = vmatpush3.bf16.msra.mxu1 %v775_v22  ;;  %p792_p3 = pnand %p791_p2, %p785_p13 }
  0x21   : > { %750 = vset.pattern.permute.xlu1 %v847_v5  ;;  %749 = vset.pattern.permute.xlu0 %v847_v5 }
  0x22   : > { %221 = vperm.xlu1 %750, %v935_v4   ;;  %218 = vperm.xlu0 %749, %v929_v2  }
  0x23   : > { %661 = vmatprep.subr.bf16.mxu0 %v776_v23  ;;  %684 = vmatprep.subr.bf16.mxu1 %v776_v23 }
  0x24   : > { %662 = vmatpush3.bf16.msra.mxu0 %v777_v24  ;;  %692 = vmatpush3.bf16.msra.mxu1 %v777_v24 }
  0x25   : > { %663 = vmatprep.subr.bf16.mxu0 %v778_v25  ;;  %685 = vmatprep.subr.bf16.mxu1 %v778_v25 }
  0x26   : > { %224 = vperm.xlu1 %750, %v927_v1   ;;  %227 = vperm.xlu0 %749, %v931_v3  }
  0x28   : > { %664 = vmatpush3.bf16.msra.mxu0 %v779_v26  ;;  %693 = vmatpush3.bf16.msra.mxu1 %v779_v26 }
  0x29   : > { %665 = vmatprep.subr.bf16.mxu0 %v780_v27  ;;  %686 = vmatprep.subr.bf16.mxu1 %v780_v27 }
  0x2a   : > { %751 = vset.pattern.permute.xlu1 %v848_v6  ;;  %752 = vset.pattern.permute.xlu0 %v848_v6 }
  0x2b   : > { %238 = vperm.xlu1 %751, %v929_v2   ;;  %241 = vperm.xlu0 %752, %v935_v4  }
  0x2c   : > { %666 = vmatpush3.bf16.msra.mxu0 %v781_v28  ;;  %694 = vmatpush3.bf16.msra.mxu1 %v781_v28 }
  0x2f   : > { %244 = vperm.xlu1 %751, %v927_v1   ;;  %753 = vset.pattern.permute.xlu0 %v849_v7 }
  0x30   : > { %258 = vperm.xlu0 %753, %v929_v2  }
  0x33   : > { %247 = vperm.xlu1 %751, %v931_v3  }
  0x34   : > { %267 = vperm.xlu0 %753, %v931_v3  }
  0x37   : > { %754 = vset.pattern.permute.xlu1 %v849_v7 }
  0x38   : > { %261 = vperm.xlu1 %754, %v935_v4   ;;  %756 = vset.pattern.permute.xlu0 %v850_v8 }
  0x39   : > { %281 = vperm.xlu0 %756, %v935_v4  }
  0x3c   : > { %264 = vperm.xlu1 %754, %v927_v1  }
  0x3d   : > { %757 = vset.pattern.permute.xlu0 %v851_v9 }
  0x3e   : > { %298 = vperm.xlu0 %757, %v929_v2  }
  0x40   : > { %755 = vset.pattern.permute.xlu1 %v850_v8 }
  0x41   : > { %278 = vperm.xlu1 %755, %v929_v2  }
  0x42   : > { %307 = vperm.xlu0 %757, %v931_v3  }
  0x45   : > { %284 = vperm.xlu1 %755, %v927_v1  }
  0x46   : > { %760 = vset.pattern.permute.xlu0 %v852_v10 }
  0x47   : > { %321 = vperm.xlu0 %760, %v935_v4  }
  0x49   : > { %287 = vperm.xlu1 %755, %v931_v3  }
  0x4b   : > { %761 = vset.pattern.permute.xlu0 %v853_v11 }
  0x4c   : > { %153 = vperm.xlu0 %761, %v929_v2  }
  0x4d   : > { %758 = vset.pattern.permute.xlu1 %v851_v9 }
  0x4e   : > { %301 = vperm.xlu1 %758, %v935_v4  }
  0x50   : > { %162 = vperm.xlu0 %761, %v931_v3  }
  0x52   : > { %304 = vperm.xlu1 %758, %v927_v1  }
  0x54   : > { %764 = vset.pattern.permute.xlu0 %v854_v16 }
  0x55   : > { %172 = vperm.xlu0 %764, %v935_v4  }
  0x56   : > { %759 = vset.pattern.permute.xlu1 %v852_v10 }
  0x57   : > { %318 = vperm.xlu1 %759, %v929_v2  }
  0x59   : > { %765 = vset.pattern.permute.xlu0 %v852_v10 }
  0x5b   : > { %324 = vperm.xlu1 %759, %v927_v1  }
  0x5f   : > { %327 = vperm.xlu1 %759, %v931_v3  }
  0x63   : > { %762 = vset.pattern.permute.xlu1 %v853_v11 }
  0x64   : > { %156 = vperm.xlu1 %762, %v935_v4  }
  0x68   : > { %159 = vperm.xlu1 %762, %v927_v1  }
  0x6c   : > { %763 = vset.pattern.permute.xlu1 %v854_v16 }
  0x6d   : > { %169 = vperm.xlu1 %763, %v929_v2  }
  0x71   : > { %175 = vperm.xlu1 %763, %v927_v1  }
  0x75   : > { %178 = vperm.xlu1 %763, %v931_v3  }
  0x98   : > { %v209_v29 = vpop.permute.xlu1 %208  ;;  %v203_v30 = vpop.permute.xlu0 %202 }
  0x99   : > { %vm213_vm2 = vcmp.eq.s32.totalorder %v203_v30, %v1022_v50  ;;  %vm215_vm7 = vcmp.eq.s32.totalorder %v209_v29, %v1022_v50 }
  0x9c   : > { %v212_v31 = vpop.permute.xlu1 %211  ;;  %v206_v32 = vpop.permute.xlu0 %205 }
  0x9d   : > { %vm214_vm0 = vcmp.eq.s32.totalorder %v206_v32, %v1022_v50  ;;  %vm216_vm10 = vcmp.eq.s32.totalorder %v212_v31, %v1022_v50 }
  0xa1   : > { %v222_v33 = vpop.permute.xlu1 %221  ;;  %v219_v34 = vpop.permute.xlu0 %218 }
  0xa2   : > { %vm230_vm1 = vcmp.eq.s32.totalorder %v222_v33, %v1022_v50  ;;  %vm229_vm3 = vcmp.eq.s32.totalorder %v219_v34, %v1022_v50 }
  0xa3   : > { %vm234_vm5 = vmor %vm214_vm0, %vm230_vm1 }
  0xa4   : > { %vm233_vm8 = vmor %vm213_vm2, %vm229_vm3 }
  0xa5   : > { %v225_v35 = vpop.permute.xlu1 %224  ;;  %v228_v36 = vpop.permute.xlu0 %227 }
  0xa6   : > { %vm231_vm4 = vcmp.eq.s32.totalorder %v225_v35, %v1022_v50  ;;  %vm232_vm6 = vcmp.eq.s32.totalorder %v228_v36, %v1022_v50 }
  0xa7   : > { %vm235_vm11 = vmor %vm215_vm7, %vm231_vm4 }
  0xa8   : > { %vm1034_vm13 = vmor %vm216_vm10, %vm232_vm6 }
  0xa9   : > { %v1128_v54 = vsel %vm1034_vm13, 4294967295, %v1127_v54 }
  0xaa   : > { %v239_v37 = vpop.permute.xlu1 %238  ;;  %v242_v39 = vpop.permute.xlu0 %241 }
  0xab   : > { %vm250_vm9 = vcmp.eq.s32.totalorder %v242_v39, %v1022_v50  ;;  %vm249_vm14 = vcmp.eq.s32.totalorder %v239_v37, %v1022_v50 }
  0xac   : > { %vm254_vm15 = vmor %vm234_vm5, %vm250_vm9 }
  0xad   : > { %vm253_vm4 = vmor %vm233_vm8, %vm249_vm14 }
  0xae   : > { %v245_v38 = vpop.permute.xlu1 %244 }
  0xaf   : > { %v259_v41 = vpop.permute.xlu0 %258  ;;  %vm251_vm0 = vcmp.eq.s32.totalorder %v245_v38, %v1022_v50 }
  0xb0   : > { %vm269_vm1 = vcmp.eq.s32.totalorder %v259_v41, %v1022_v50  ;;  %vm1043_vm6 = vmor %vm235_vm11, %vm251_vm0  ;;  %vm1131_vm0 = vnez %v1128_v54 }
  0xb1   : > { %v1130_v57 = vsel %vm1043_vm6, 4294967295, %v1129_v57  ;;  %vm273_vm10 = vmor %vm253_vm4, %vm269_vm1 }
  0xb2   : > { %v248_v40 = vpop.permute.xlu1 %247 }
  0xb3   : > { %v268_v44 = vpop.permute.xlu0 %267  ;;  %vm252_vm5 = vcmp.eq.s32.totalorder %v248_v40, %v1022_v50 }
  0xb4   : > { %vm256_vm11 = vmor %vm1131_vm0, %vm252_vm5  ;;  %vm272_vm6 = vcmp.eq.s32.totalorder %v268_v44, %v1022_v50  ;;  %vm1132_vm5 = vnez %v1130_v57 }
  0xb7   : > { %v262_v42 = vpop.permute.xlu1 %261 }
  0xb8   : > { %v282_v48 = vpop.permute.xlu0 %281  ;;  %vm270_vm12 = vcmp.eq.s32.totalorder %v262_v42, %v1022_v50 }
  0xb9   : > { %vm274_vm2 = vmor %vm254_vm15, %vm270_vm12  ;;  %vm290_vm3 = vcmp.eq.s32.totalorder %v282_v48, %v1022_v50 }
  0xba   : > { %vm294_vm9 = vmor %vm274_vm2, %vm290_vm3 }
  0xbb   : > { %v265_v43 = vpop.permute.xlu1 %264 }
  0xbc   : > { %vm271_vm4 = vcmp.eq.s32.totalorder %v265_v43, %v1022_v50 }
  0xbd   : > { %v299_v51 = vpop.permute.xlu0 %298  ;;  %vm275_vm0 = vmor %vm1132_vm5, %vm271_vm4 }
  0xbe   : > { %vm309_vm14 = vcmp.eq.s32.totalorder %v299_v51, %v1022_v50 }
  0xc0   : > { %v279_v46 = vpop.permute.xlu1 %278 }
  0xc1   : > { %v308_v53 = vpop.permute.xlu0 %307  ;;  %vm289_vm13 = vcmp.eq.s32.totalorder %v279_v46, %v1022_v50 }
  0xc2   : > { %vm293_vm8 = vmor %vm273_vm10, %vm289_vm13 }
  0xc3   : > { %vm313_vm2 = vmor %vm293_vm8, %vm309_vm14 }
  0xc4   : > { %v285_v49 = vpop.permute.xlu1 %284  ;;  %vm276_vm10 = vmor %vm256_vm11, %vm272_vm6 }
  0xc6   : > { %v322_v56 = vpop.permute.xlu0 %321 }
  0xc7   : > { %vm330_vm15 = vcmp.eq.s32.totalorder %v322_v56, %v1022_v50 }
  0xc8   : > { %v288_v52 = vpop.permute.xlu1 %287 }
  0xc9   : > { %vm292_vm13 = vcmp.eq.s32.totalorder %v288_v52, %v1022_v50 }
  0xca   : > { %vm296_vm14 = vmor %vm276_vm10, %vm292_vm13 }
  0xcb   : > { %v154_v1 = vpop.permute.xlu0 %153 }
  0xcc   : > { %vm164_vm10 = vcmp.eq.s32.totalorder %v154_v1, %v1019_v47 }
  0xcd   : > { %v302_v55 = vpop.permute.xlu1 %301 }
  0xce   : > { %vm310_vm7 = vcmp.eq.s32.totalorder %v302_v55, %v1022_v50 }
  0xcf   : > { %vm314_vm12 = vmor %vm294_vm9, %vm310_vm7  ;;  %vm291_vm7 = vcmp.eq.s32.totalorder %v285_v49, %v1022_v50  ;;  %v163_v3 = vpop.permute.xlu0 %162 }
  0xd0   : > { %vm334_vm1 = vmor %vm314_vm12, %vm330_vm15 }
  0xd1   : > { %v305_v58 = vpop.permute.xlu1 %304  ;;  %v622_v62 = vsel %vm334_vm1, 1.0, %v855_v60  ;;  %vm295_vm15 = vmor %vm275_vm0, %vm291_vm7 }
  0xd2   : > { %vm311_vm12 = vcmp.eq.s32.totalorder %v305_v58, %v1022_v50 }
  0xd3   : > { %vm315_vm6 = vmor %vm295_vm15, %vm311_vm12 }
  0xd4   : > { %v173_v8 = vpop.permute.xlu0 %172 }
  0xd5   : > { %vm181_vm7 = vcmp.eq.s32.totalorder %v173_v8, %v1019_v47 }
  0xd6   : > { %v319_v59 = vpop.permute.xlu1 %318 }
  0xd7   : > { %vm329_vm3 = vcmp.eq.s32.totalorder %v319_v59, %v1022_v50 }
  0xd8   : > { %vm333_vm9 = vmor %vm313_vm2, %vm329_vm3  ;;  %vm312_vm2 = vcmp.eq.s32.totalorder %v308_v53, %v1022_v50 }
  0xd9   : > { %v621_v61 = vsel %vm333_vm9, 1.0, %v855_v60  ;;  %vm316_vm3 = vmor %vm296_vm14, %vm312_vm2  ;;  %vm167_vm14 = vcmp.eq.s32.totalorder %v163_v3, %v1019_v47 }
  0xda   : > { %v325_v63 = vpop.permute.xlu1 %324  ;;  %v345_v0 = vpack.c.bf16 %v622_v62, %v621_v61 }
  0xdb   : > { %vm331_vm8 = vcmp.eq.s32.totalorder %v325_v63, %v1022_v50 }
  0xdc   : > { %513 = vmatprep.mubr.bf16.mxu0 %v345_v0  ;;  %vm335_vm11 = vmor %vm315_vm6, %vm331_vm8 }
  0xdd   : > { %v623_v4 = vsel %vm335_vm11, 1.0, %v855_v60 }
  0xde   : > { %v328_v2 = vpop.permute.xlu1 %327 }
  0xdf   : > { %vm332_vm1 = vcmp.eq.s32.totalorder %v328_v2, %v1022_v50 }
  0xe0   : > { %vm336_vm9 = vmor %vm316_vm3, %vm332_vm1 }
  0xe1   : > { %v624_v5 = vsel %vm336_vm9, 1.0, %v855_v60 }
  0xe2   : > { %v346_v6 = vpack.c.bf16 %v624_v5, %v623_v4 }
  0xe3   : > { %v157_v7 = vpop.permute.xlu1 %156 }
  0xe4   : > { %521 = vmatprep.mubr.bf16.mxu1 %v346_v6  ;;  %vm165_vm4 = vcmp.eq.s32.totalorder %v157_v7, %v1019_v47 }
  0xe5   : > { %vm185_vm13 = vmor %vm165_vm4, %vm181_vm7 }
  0xe7   : > { %v160_v9 = vpop.permute.xlu1 %159 }
  0xe8   : > { %vm166_vm8 = vcmp.eq.s32.totalorder %v160_v9, %v1019_v47 }
  0xec   : > { %v170_v10 = vpop.permute.xlu1 %169 }
  0xed   : > { %vm180_vm5 = vcmp.eq.s32.totalorder %v170_v10, %v1019_v47 }
  0xee   : > { %vm184_vm0 = vmor %vm164_vm10, %vm180_vm5 }
  0xef   : > { %vm647_vm12 = vmpackc.low %vm185_vm13, %vm184_vm0 }
  0xf0   : > { %v176_v11 = vpop.permute.xlu1 %175  ;;  %648 = vmatmul.mubr.msk.bf16.vlgmr.msra.gmra.mrb[0].mxu0 %vm647_vm12, %v856_v12 }
  0xf1   : > { %vm182_vm15 = vcmp.eq.s32.totalorder %v176_v11, %v1019_v47 }
  0xf2   : > { %vm186_vm2 = vmor %vm166_vm8, %vm182_vm15 }
  0xf4   : > { %v179_v13 = vpop.permute.xlu1 %178 }
  0xf5   : > { %vm183_vm6 = vcmp.eq.s32.totalorder %v179_v13, %v1019_v47 }
  0xf6   : > { %vm187_vm11 = vmor %vm167_vm14, %vm183_vm6 }
  0xf7   : > { %vm649_vm3 = vmpackc.low %vm187_vm11, %vm186_vm2 }
  0xf8   : > { %650 = vmatmul.mubr.msk.bf16.vlgmr.msra.gmra.mrb[0].mxu1 %vm649_vm3, %v856_v12 }
 0x1c3   : > { %v667_v14 = vpop.f32.mrb[0].mxu0 }
 0x1c4   : > { %v668_v15 = vpop.f32.mrb[1].mxu0 }
 0x1c5   : > { %v669_v16 = vadd.f32 %v668_v15, %v667_v14  ;;  %v670_v17 = vpop.f32.mrb[2].mxu0 }
 0x1c6   : > { %v671_v18 = vpop.f32.mrb[3].mxu0 }
 0x1c7   : > { %530 = vst [vmem:[%s137_s22] sm:$0xff] %v669_v16  ;;  %v672_v19 = vadd.f32 %v671_v18, %v670_v17 }
 0x1c9   : > { %531 = vst [vmem:[%s137_s22 + $0x8] sm:$0xff] %v672_v19 }
 0x1cb   : > { %v673_v20 = vpop.f32.mrb[0].mxu1 }
 0x1cc   : > { %v674_v21 = vpop.f32.mrb[1].mxu1 }
 0x1cd   : > { %v675_v22 = vadd.f32 %v674_v21, %v673_v20  ;;  %v676_v23 = vpop.f32.mrb[2].mxu1 }
 0x1ce   : > { %v677_v24 = vpop.f32.mrb[3].mxu1 }
 0x1cf   : > { %532 = vst [vmem:[%s137_s22 + $0x10] sm:$0xff] %v675_v22  ;;  %v678_v25 = vadd.f32 %v677_v24, %v676_v23 }
 0x1d1   : > { %533 = vst [vmem:[%s137_s22 + $0x18] sm:$0xff] %v678_v25 }
 0x1d2   : > { %795 = shalt.err (!%p792_p3)
}
 0x1d3   : > { %s796_s4 = scalar_lea.hbm %s1079_s27, 512  ;;  %s800_s7 = scalar_lea.hbm %s1124_s2, 2048 }
 0x1d4   : > { %p797_p4 = scmp.ne.s32.totalorder %s1079_s27, %s796_s4  ;;  %p801_p9 = scmp.lt.u32.totalorder %s1079_s27, %s1124_s2 }
 0x1d5   : > { %p802_p10 = scmp.lt.u32.totalorder %s800_s7, %s796_s4  ;;  %p804_p12 = scmp.lt.u32.totalorder %s796_s4, %s1079_s27 }
 0x1d6   : > { %p798_p7 = pnand %p797_p4, %p913_p5 }
 0x1d7   : > { %p803_p11 = por %p802_p10, %p801_p9 }
 0x1d8   : > { %p799_p8 = pneg %p798_p7 }
 0x1d9   : > { %p805_p13 = por %p804_p12, %p803_p11 }
 0x1db   : > { %p806_p0 = pnand %p805_p13, %p799_p8 }
 0x1dd   : > { %809 = shalt.err (!%p806_p0)
}
 0x1de   : > { %s858_s16 = smov 128   ;;  %s859_s17 = smov 8  }
 0x1df   : > { %695 = dma.vmem_to_hbm [thread:$0]  (%p913_p5), %s1074_s23, 512, %s1079_s27, %s1081_s28, %s858_s16, %s858_s16, %s859_s17  }
 0x1e0 PF: > { %p701_p1 = scmp.ge.s32.totalorder %s844_s12, 2  ;;  %s563_s21 = sand.u32 1, %s832_s9  }
 0x1e1   : > { %s564_s22 = scalar_lea.sflag [#allocation4], %s563_s21 }
 0x1e2   : > { %p698_p2 = pnand %p701_p1, %p917_p6 }
 0x1e4   : > { %827 = dma.done.wait (!%p698_p2), %s564_s22, 512  }
 0x1e5   : > { %829 = vsyncadd (!%p698_p2), %s564_s22, 4294966784  ;;  %p12_p3 = scmp.ge.s32.totalorder %s900_s15, 6   ;;  %s1133_s9 = smov %s836_s10 }
 0x1e6   : > { %s1134_s10 = smov %s840_s11  ;;  %s1135_s11 = smov %s911_s18 }
 0x1e7   : > { %s1136_s12 = smov %s900_s15  ;;  %14 = sbr.rel (!%p12_p3) target bundleno = 3 (0x3), region = 63 }
 0x1ee   :  { %569 = vsyncpa [#allocation4], 1 }
 0x1ef   :  { %571 = vsyncpa [#allocation4 + $0x1], 1 }

</bundles_post_ra>
